<compile_context>
chip_gen: v7x
topology: tpu7x:2x2x1
jax: 0.10.0
libtpu: 0.0.40
codegen_flags: <defaults>
</compile_context>

<pallas_src>
import functools
import math

import jax
import jax.numpy as jnp
from jax import lax
from jax.experimental import pallas as pl
from jax.experimental.pallas import tpu as pltpu


# ---------------------------------------------------------------------------
# hardware-aware helpers
# ---------------------------------------------------------------------------
@functools.lru_cache(maxsize=None)
def _vmem_capacity_bytes():
    """Physical VMEM per TensorCore (64 MiB v7x, 128 MiB v5e/v6e)."""
    try:
        return int(getattr(pltpu.get_tpu_info(), "vmem_capacity_bytes"))
    except Exception:
        return 64 << 20  # conservative fallback (v7x size) — safe everywhere


def _round_up(x, m):
    return ((x + m - 1) // m) * m


def _pick_tile(dim, pref, align):
    """Largest tile <= pref that divides `dim` and is a multiple of `align`.

    Falls back to the full dim (always a legal block shape).  Callers that
    could hit a pathological full-dim fallback (the N axis of adj) pad N to a
    multiple of 128 first, so a small aligned divisor always exists.
    """
    if dim <= pref:
        return dim
    t = (pref // align) * align
    while t >= align:
        if dim % t == 0:
            return t
        t -= align
    return dim


def _compiler_params(dim_semantics, vmem_bytes_needed):
    cap = _vmem_capacity_bytes()
    limit = int(min(max(int(1.25 * vmem_bytes_needed) + (4 << 20), 32 << 20),
                    cap - (2 << 20)))
    return pltpu.CompilerParams(dimension_semantics=dim_semantics,
                                vmem_limit_bytes=limit)


def _fused_vmem_need(n, f_in, f_out):
    # adj + h + w scratch (single-buffered, manual DMA) + out double-buffer
    # + a few live (N, F_out) intermediates in the unrolled hop chain.
    return 4 * (n * n + n * f_in + f_in * f_out + 6 * n * f_out) + (1 << 20)


# ---------------------------------------------------------------------------
# Kernel 1: fully fused SGC forward (small problems, everything VMEM-resident)
#   adj/h/w arrive as raw HBM refs (pl.ANY); we DMA them ourselves so the big
#   adj transfer overlaps the h @ w matmul and nothing is double-buffered.
# ---------------------------------------------------------------------------
def _sgc_fused_kernel(adj_hbm, h_hbm, w_hbm, o_ref,
                      adj_vmem, h_vmem, w_vmem, dma_sems, *, n_prop):
    adj_cp = pltpu.make_async_copy(adj_hbm, adj_vmem, dma_sems.at[0])
    h_cp = pltpu.make_async_copy(h_hbm, h_vmem, dma_sems.at[1])
    w_cp = pltpu.make_async_copy(w_hbm, w_vmem, dma_sems.at[2])
    adj_cp.start()
    h_cp.start()
    w_cp.start()

    # h @ w runs while the (much larger) adj transfer is still in flight.
    h_cp.wait()
    w_cp.wait()
    x = jnp.dot(h_vmem[...], w_vmem[...], preferred_element_type=jnp.float32)

    adj_cp.wait()
    adj = adj_vmem[...]
    # (k+1) propagation hops; k is static -> fully unrolled MXU chain.
    for _ in range(n_prop):
        x = jnp.dot(adj, x, preferred_element_type=jnp.float32)

    # Row-wise log_softmax epilogue (max-stabilized); result stored once.
    m = jnp.max(x, axis=-1, keepdims=True)
    z = x - m
    lse = jnp.log(jnp.sum(jnp.exp(z), axis=-1, keepdims=True))
    o_ref[...] = (z - lse).astype(o_ref.dtype)


def sgc_forward_fused(h, adj, w, k):
    n = adj.shape[0]
    f_in = h.shape[1]
    f_out = w.shape[1]
    vmem_need = _fused_vmem_need(n, f_in, f_out)
    return pl.pallas_call(
        functools.partial(_sgc_fused_kernel, n_prop=k + 1),
        out_shape=jax.ShapeDtypeStruct((n, f_out), jnp.float32),
        grid_spec=pltpu.PrefetchScalarGridSpec(
            num_scalar_prefetch=0,
            grid=(1,),
            in_specs=[
                pl.BlockSpec(memory_space=pl.ANY),   # adj  (manual DMA)
                pl.BlockSpec(memory_space=pl.ANY),   # h    (manual DMA)
                pl.BlockSpec(memory_space=pl.ANY),   # w    (manual DMA)
            ],
            out_specs=pl.BlockSpec((n, f_out), lambda i: (0, 0)),
            scratch_shapes=[
                pltpu.VMEM((n, n), jnp.float32),
                pltpu.VMEM((n, f_in), jnp.float32),
                pltpu.VMEM((f_in, f_out), jnp.float32),
                pltpu.SemaphoreType.DMA((3,)),
            ],
        ),
        compiler_params=_compiler_params(("arbitrary",), vmem_need),
        cost_estimate=pl.CostEstimate(
            flops=2 * n * f_in * f_out + 2 * (k + 1) * n * n * f_out,
            transcendentals=n * (f_out + 1),
            bytes_accessed=4 * (n * n + n * f_in + f_in * f_out + n * f_out)),
    )(adj, h, w)


# ---------------------------------------------------------------------------
# Kernel 2: general 3-axis tiled matmul (used once, for h @ w)
# ---------------------------------------------------------------------------
def _matmul_kernel(a_ref, b_ref, o_ref, acc_ref):
    @pl.when(pl.program_id(2) == 0)
    def _init():
        acc_ref[...] = jnp.zeros_like(acc_ref)

    acc_ref[...] += jnp.dot(a_ref[...], b_ref[...],
                            preferred_element_type=jnp.float32)

    @pl.when(pl.program_id(2) == pl.num_programs(2) - 1)
    def _store():
        o_ref[...] = acc_ref[...].astype(o_ref.dtype)


def pallas_matmul(a, b, tm_pref=512, tn_pref=512, tk_pref=512):
    m, k = a.shape
    k2, n = b.shape
    assert k == k2, (a.shape, b.shape)
    tm = _pick_tile(m, tm_pref, 8)
    tn = _pick_tile(n, tn_pref, 128)
    tk = _pick_tile(k, tk_pref, 128)
    grid = (m // tm, n // tn, k // tk)
    vmem_need = 4 * (2 * (tm * tk + tk * tn) + 2 * tm * tn + tm * tn)
    return pl.pallas_call(
        _matmul_kernel,
        out_shape=jax.ShapeDtypeStruct((m, n), jnp.float32),
        grid_spec=pltpu.PrefetchScalarGridSpec(
            num_scalar_prefetch=0,
            grid=grid,
            in_specs=[
                pl.BlockSpec((tm, tk), lambda i, j, kk: (i, kk)),
                pl.BlockSpec((tk, tn), lambda i, j, kk: (kk, j)),
            ],
            out_specs=pl.BlockSpec((tm, tn), lambda i, j, kk: (i, j)),
            scratch_shapes=[pltpu.VMEM((tm, tn), jnp.float32)],
        ),
        compiler_params=_compiler_params(
            ("parallel", "parallel", "arbitrary"), vmem_need),
        cost_estimate=pl.CostEstimate(
            flops=2 * m * n * k, transcendentals=0,
            bytes_accessed=4 * (m * k + k * n + m * n)),
    )(a, b)


# ---------------------------------------------------------------------------
# Kernels 3/4: transposed propagation hop (lane-dense) and its log_softmax
# variant.  xT has shape (F_out, N) and stays fully VMEM-resident; adj is
# streamed as contiguous row tiles; the contraction is a qk^T-style
# dot_general (contract last dims of both operands), i.e.
#   new_xT[f, n] = sum_m xT[f, m] * adj[n, m]  ==  (adj @ x)^T .
# ---------------------------------------------------------------------------
def _prop_t_kernel(xt_ref, adj_ref, o_ref):
    o_ref[...] = lax.dot_general(
        xt_ref[...], adj_ref[...],
        dimension_numbers=(((1,), (1,)), ((), ())),
        preferred_element_type=jnp.float32).astype(o_ref.dtype)


def _prop_t_logsoftmax_kernel(xt_ref, adj_ref, o_ref):
    s = lax.dot_general(
        xt_ref[...], adj_ref[...],
        dimension_numbers=(((1,), (1,)), ((), ())),
        preferred_element_type=jnp.float32)            # (F_out, tn)
    # log_softmax over the class axis (axis 0 in transposed layout).
    m = jnp.max(s, axis=0, keepdims=True)
    z = s - m
    lse = jnp.log(jnp.sum(jnp.exp(z), axis=0, keepdims=True))
    o_ref[...] = (z - lse).astype(o_ref.dtype)         # lane-dense store


def _prop_specs(f_out, n_p, tn):
    in_specs = [
        pl.BlockSpec((f_out, n_p), lambda j: (0, 0)),   # xT: resident, loaded once
        pl.BlockSpec((tn, n_p), lambda j: (j, 0)),      # adj: contiguous row tile
    ]
    out_specs = pl.BlockSpec((f_out, tn), lambda j: (0, j))
    vmem_need = 4 * (2 * f_out * n_p + 2 * tn * n_p + 4 * f_out * tn) + (2 << 20)
    return in_specs, out_specs, vmem_need


def pallas_prop_transposed(xt, adj, tn, with_logsoftmax=False):
    f_out, n_p = xt.shape
    grid = (n_p // tn,)
    in_specs, out_specs, vmem_need = _prop_specs(f_out, n_p, tn)
    kernel = _prop_t_logsoftmax_kernel if with_logsoftmax else _prop_t_kernel
    return pl.pallas_call(
        kernel,
        out_shape=jax.ShapeDtypeStruct((f_out, n_p), jnp.float32),
        grid_spec=pltpu.PrefetchScalarGridSpec(
            num_scalar_prefetch=0,
            grid=grid,
            in_specs=in_specs,
            out_specs=out_specs,
        ),
        compiler_params=_compiler_params(("parallel",), vmem_need),
        cost_estimate=pl.CostEstimate(
            flops=2 * f_out * n_p * n_p,
            transcendentals=(n_p * (f_out + 1)) if with_logsoftmax else 0,
            bytes_accessed=4 * (f_out * n_p + n_p * n_p + f_out * n_p)),
    )(xt, adj)


# ---------------------------------------------------------------------------
# Tiled forward (large / general N)
# ---------------------------------------------------------------------------
def sgc_forward_tiled(h, adj, w, k):
    n = adj.shape[0]
    f_out = w.shape[1]

    # Zero-pad N to a multiple of 128 so lane-dense tiles always divide.
    # Zero rows/cols are inert for every matmul; padded rows are sliced off.
    n_p = _round_up(n, 128)
    if n_p != n:
        adj = jnp.pad(adj, ((0, n_p - n), (0, n_p - n)))
        h = jnp.pad(h, ((0, n_p - n), (0, 0)))

    cap = _vmem_capacity_bytes()

    # Feature transform (done once, cheap): x = h @ w  -> (Np, F_out).
    x = pallas_matmul(h, w)
    # Propagate in transposed (F_out, Np) form (lane-dense).
    xt = x.T

    # adj row-tile rows per grid step: biggest tile such that the
    # double-buffered adj stream uses ~40% of physical VMEM (>= 128).
    # TODO(synk): for extreme N where even a 128-row tile overflows VMEM,
    # fall back to splitting the contraction axis.
    tn_budget = max(128, int(0.40 * cap) // (8 * n_p))
    tn_pref = max(128, min(1024, (tn_budget // 128) * 128))
    tn = _pick_tile(n_p, tn_pref, 128)

    for _ in range(k):                                   # k of the (k+1) hops
        xt = pallas_prop_transposed(xt, adj, tn)
    # Final hop fused with the log_softmax epilogue (still lane-dense store);
    # the single tiny transpose back to (N, F_out) happens in XLA.
    out_t = pallas_prop_transposed(xt, adj, tn, with_logsoftmax=True)
    return jnp.transpose(out_t)[:n]


# ---------------------------------------------------------------------------
# SGC module (JAX wrapper; hot path in Pallas)
# ---------------------------------------------------------------------------
class SGC:
    def __init__(self, input_feature, output_feature, k, key):
        self.input_feature = input_feature
        self.output_feature = output_feature
        self.k = k
        # xavier_uniform_(gain=1): U(-b, b), b = sqrt(6 / (fan_in + fan_out))
        bound = math.sqrt(6.0 / (input_feature + output_feature))
        self.w = jax.random.uniform(
            key, (input_feature, output_feature),
            minval=-bound, maxval=bound, dtype=jnp.float32)

    def __call__(self, h, adj, force_tiled=False):
        n = adj.shape[0]
        f_in, f_out = self.w.shape
        cap = _vmem_capacity_bytes()
        # Generation-aware dispatch: fused single-launch path whenever adj/h/w
        # comfortably fit VMEM (~65% of 64 MiB on v7x, of 128 MiB on v5e/v6e).
        # Note: the fused kernel runs on a single TensorCore; the tiled path's
        # row axis is "parallel" and shards across both v7x TensorCores.
        if not force_tiled and _fused_vmem_need(n, f_in, f_out) <= int(0.65 * cap):
            return sgc_forward_fused(h, adj, self.w, self.k)
        return sgc_forward_tiled(h, adj, self.w, self.k)


# ---------------------------------------------------------------------------
# Main
# ---------------------------------------------------------------------------
if __name__ == "__main__":
    def reference(h, adj, w, k):
        # Pure-JAX reference in the ORIGINAL PyTorch op order.
        ref = adj
        for _ in range(k):
            ref = ref @ adj
        ref = ref @ h
        ref = ref @ w
        return jax.nn.log_softmax(ref, axis=1)

    key = jax.random.PRNGKey(0)
    k_adj, k_h, k_w = jax.random.split(key, 3)

    # Case 1: lane-aligned graph — exercises both the fused and tiled paths.
    N, F_IN, F_OUT, K = 128, 64, 32, 2
    adj = jax.random.uniform(k_adj, (N, N), dtype=jnp.float32) * 0.05
    h = jax.random.normal(k_h, (N, F_IN), dtype=jnp.float32)
    model = SGC(F_IN, F_OUT, K, k_w)

    out_fused = jax.block_until_ready(model(h, adj))
    out_tiled = jax.block_until_ready(model(h, adj, force_tiled=True))
    ref = reference(h, adj, model.w, K)

    assert out_fused.shape == (N, F_OUT)
    assert out_tiled.shape == (N, F_OUT)
    assert jnp.allclose(out_fused, ref, atol=1e-3, rtol=1e-3), \
        float(jnp.max(jnp.abs(out_fused - ref)))
    assert jnp.allclose(out_tiled, ref, atol=1e-3, rtol=1e-3), \
        float(jnp.max(jnp.abs(out_tiled - ref)))

    # Case 2: ragged N (not a multiple of 128) — exercises the tiled path's
    # zero-padding logic.
    N2 = 160
    k_adj2, k_h2 = jax.random.split(jax.random.PRNGKey(1), 2)
    adj2 = jax.random.uniform(k_adj2, (N2, N2), dtype=jnp.float32) * 0.02
    h2 = jax.random.normal(k_h2, (N2, F_IN), dtype=jnp.float32)

    out2 = jax.block_until_ready(model(h2, adj2, force_tiled=True))
    ref2 = reference(h2, adj2, model.w, K)
    assert out2.shape == (N2, F_OUT)
    assert jnp.allclose(out2, ref2, atol=1e-3, rtol=1e-3), \
        float(jnp.max(jnp.abs(out2 - ref2)))

    print("KERNEL_OK")
</pallas_src>

<mosaic_0001>
module attributes {stable_mosaic.version = 11 : i64} {
  func.func @_sgc_fused_kernel(%arg0: i32, %arg1: memref<128x128xf32, #tpu.memory_space<any>>, %arg2: memref<128x64xf32, #tpu.memory_space<any>>, %arg3: memref<64x32xf32, #tpu.memory_space<any>>, %arg4: memref<128x32xf32, #tpu.memory_space<vmem>>, %arg5: memref<128x128xf32, #tpu.memory_space<vmem>>, %arg6: memref<128x64xf32, #tpu.memory_space<vmem>>, %arg7: memref<64x32xf32, #tpu.memory_space<vmem>>, %arg8: memref<3x!tpu.dma_semaphore, #tpu.memory_space<semaphore_mem>>) attributes {dimension_semantics = [#tpu.dimension_semantics<arbitrary>], iteration_bounds = array<i64: 1>, scalar_prefetch = 0 : i64, scratch_operands = 4 : i64, tpu.core_type = #tpu.core_type<tc>, window_params = [{}, {}, {}, {pipeline_mode = #tpu.pipeline_mode<synchronous>, transform_indices = @transform_3, window_bounds = array<i64: 128, 32>}]} {
    %c0_i32 = arith.constant 0 : i32
    %0 = tpu.memref_slice %arg8[%c0_i32] : memref<3x!tpu.dma_semaphore, #tpu.memory_space<semaphore_mem>> -> memref<1x!tpu.dma_semaphore, #tpu.memory_space<semaphore_mem>>
    %1 = tpu.memref_squeeze %0 : memref<1x!tpu.dma_semaphore, #tpu.memory_space<semaphore_mem>> -> memref<!tpu.dma_semaphore, #tpu.memory_space<semaphore_mem>>
    tpu.enqueue_dma source(%arg1 : memref<128x128xf32, #tpu.memory_space<any>>) target(%arg5 : memref<128x128xf32, #tpu.memory_space<vmem>>) target_semaphore(%1 : memref<!tpu.dma_semaphore, #tpu.memory_space<semaphore_mem>>)
    %c1_i32 = arith.constant 1 : i32
    %2 = tpu.memref_slice %arg8[%c1_i32] : memref<3x!tpu.dma_semaphore, #tpu.memory_space<semaphore_mem>> -> memref<1x!tpu.dma_semaphore, #tpu.memory_space<semaphore_mem>>
    %3 = tpu.memref_squeeze %2 : memref<1x!tpu.dma_semaphore, #tpu.memory_space<semaphore_mem>> -> memref<!tpu.dma_semaphore, #tpu.memory_space<semaphore_mem>>
    tpu.enqueue_dma source(%arg2 : memref<128x64xf32, #tpu.memory_space<any>>) target(%arg6 : memref<128x64xf32, #tpu.memory_space<vmem>>) target_semaphore(%3 : memref<!tpu.dma_semaphore, #tpu.memory_space<semaphore_mem>>)
    %c2_i32 = arith.constant 2 : i32
    %4 = tpu.memref_slice %arg8[%c2_i32] : memref<3x!tpu.dma_semaphore, #tpu.memory_space<semaphore_mem>> -> memref<1x!tpu.dma_semaphore, #tpu.memory_space<semaphore_mem>>
    %5 = tpu.memref_squeeze %4 : memref<1x!tpu.dma_semaphore, #tpu.memory_space<semaphore_mem>> -> memref<!tpu.dma_semaphore, #tpu.memory_space<semaphore_mem>>
    tpu.enqueue_dma source(%arg3 : memref<64x32xf32, #tpu.memory_space<any>>) target(%arg7 : memref<64x32xf32, #tpu.memory_space<vmem>>) target_semaphore(%5 : memref<!tpu.dma_semaphore, #tpu.memory_space<semaphore_mem>>)
    %c1_i32_0 = arith.constant 1 : i32
    %6 = tpu.memref_slice %arg8[%c1_i32_0] : memref<3x!tpu.dma_semaphore, #tpu.memory_space<semaphore_mem>> -> memref<1x!tpu.dma_semaphore, #tpu.memory_space<semaphore_mem>>
    %7 = tpu.memref_squeeze %6 : memref<1x!tpu.dma_semaphore, #tpu.memory_space<semaphore_mem>> -> memref<!tpu.dma_semaphore, #tpu.memory_space<semaphore_mem>>
    tpu.wait_dma2 semaphore(%7 : memref<!tpu.dma_semaphore, #tpu.memory_space<semaphore_mem>>) src(%arg2 : memref<128x64xf32, #tpu.memory_space<any>>) dst(%arg6 : memref<128x64xf32, #tpu.memory_space<vmem>>)
    %c2_i32_1 = arith.constant 2 : i32
    %8 = tpu.memref_slice %arg8[%c2_i32_1] : memref<3x!tpu.dma_semaphore, #tpu.memory_space<semaphore_mem>> -> memref<1x!tpu.dma_semaphore, #tpu.memory_space<semaphore_mem>>
    %9 = tpu.memref_squeeze %8 : memref<1x!tpu.dma_semaphore, #tpu.memory_space<semaphore_mem>> -> memref<!tpu.dma_semaphore, #tpu.memory_space<semaphore_mem>>
    tpu.wait_dma2 semaphore(%9 : memref<!tpu.dma_semaphore, #tpu.memory_space<semaphore_mem>>) src(%arg3 : memref<64x32xf32, #tpu.memory_space<any>>) dst(%arg7 : memref<64x32xf32, #tpu.memory_space<vmem>>)
    %c0 = arith.constant 0 : index
    %c0_2 = arith.constant 0 : index
    %10 = vector.load %arg6[%c0, %c0_2] : memref<128x64xf32, #tpu.memory_space<vmem>>, vector<128x64xf32>
    %c0_3 = arith.constant 0 : index
    %c0_4 = arith.constant 0 : index
    %11 = vector.load %arg7[%c0_3, %c0_4] : memref<64x32xf32, #tpu.memory_space<vmem>>, vector<64x32xf32>
    %cst = arith.constant dense<0.000000e+00> : vector<128x32xf32>
    %12 = tpu.matmul %10, %11, %cst {dimension_numbers = #tpu.dot_dimension_numbers<[1], [0], [0], [1], [0, 0, 1, 1], [], []>} : vector<128x64xf32>, vector<64x32xf32>, vector<128x32xf32> -> vector<128x32xf32>
    %c0_i32_5 = arith.constant 0 : i32
    %13 = tpu.memref_slice %arg8[%c0_i32_5] : memref<3x!tpu.dma_semaphore, #tpu.memory_space<semaphore_mem>> -> memref<1x!tpu.dma_semaphore, #tpu.memory_space<semaphore_mem>>
    %14 = tpu.memref_squeeze %13 : memref<1x!tpu.dma_semaphore, #tpu.memory_space<semaphore_mem>> -> memref<!tpu.dma_semaphore, #tpu.memory_space<semaphore_mem>>
    tpu.wait_dma2 semaphore(%14 : memref<!tpu.dma_semaphore, #tpu.memory_space<semaphore_mem>>) src(%arg1 : memref<128x128xf32, #tpu.memory_space<any>>) dst(%arg5 : memref<128x128xf32, #tpu.memory_space<vmem>>)
    %c0_6 = arith.constant 0 : index
    %c0_7 = arith.constant 0 : index
    %15 = vector.load %arg5[%c0_6, %c0_7] : memref<128x128xf32, #tpu.memory_space<vmem>>, vector<128x128xf32>
    %cst_8 = arith.constant dense<0.000000e+00> : vector<128x32xf32>
    %16 = tpu.matmul %15, %12, %cst_8 {dimension_numbers = #tpu.dot_dimension_numbers<[1], [0], [0], [1], [0, 0, 1, 1], [], []>} : vector<128x128xf32>, vector<128x32xf32>, vector<128x32xf32> -> vector<128x32xf32>
    %cst_9 = arith.constant dense<0.000000e+00> : vector<128x32xf32>
    %17 = tpu.matmul %15, %16, %cst_9 {dimension_numbers = #tpu.dot_dimension_numbers<[1], [0], [0], [1], [0, 0, 1, 1], [], []>} : vector<128x128xf32>, vector<128x32xf32>, vector<128x32xf32> -> vector<128x32xf32>
    %cst_10 = arith.constant dense<0.000000e+00> : vector<128x32xf32>
    %18 = tpu.matmul %15, %17, %cst_10 {dimension_numbers = #tpu.dot_dimension_numbers<[1], [0], [0], [1], [0, 0, 1, 1], [], []>} : vector<128x128xf32>, vector<128x32xf32>, vector<128x32xf32> -> vector<128x32xf32>
    %cst_11 = arith.constant dense<0xFF800000> : vector<128xf32>
    %19 = vector.multi_reduction <maximumf>, %18, %cst_11 [1] : vector<128x32xf32> to vector<128xf32>
    %20 = vector.shape_cast %19 : vector<128xf32> to vector<128x1xf32>
    %21 = vector.broadcast %20 : vector<128x1xf32> to vector<128x32xf32>
    %22 = arith.subf %18, %21 : vector<128x32xf32>
    %23 = math.exp %22 : vector<128x32xf32>
    %cst_12 = arith.constant dense<0.000000e+00> : vector<128xf32>
    %24 = vector.multi_reduction <add>, %23, %cst_12 [1] : vector<128x32xf32> to vector<128xf32>
    %25 = vector.shape_cast %24 : vector<128xf32> to vector<128x1xf32>
    %26 = math.log %25 : vector<128x1xf32>
    %27 = vector.broadcast %26 : vector<128x1xf32> to vector<128x32xf32>
    %28 = arith.subf %22, %27 : vector<128x32xf32>
    %c0_13 = arith.constant 0 : index
    %c0_14 = arith.constant 0 : index
    %29 = vector.load %arg4[%c0_13, %c0_14] : memref<128x32xf32, #tpu.memory_space<vmem>>, vector<128x32xf32>
    tpu.vector_store %arg4[%c0_13, %c0_14], %28 {strides = array<i32>} : memref<128x32xf32, #tpu.memory_space<vmem>>, vector<128x32xf32>,
    return
  }
  func.func @transform_3(%arg0: i32) -> (i32, i32) {
    %c0_i32 = arith.constant 0 : i32
    %c0_i32_0 = arith.constant 0 : i32
    %c0_i32_1 = arith.constant 0 : i32
    return %c0_i32, %c0_i32_0 : i32, i32
  }
}

</mosaic_0001>

<bundles_post_ra>
// kernel: tpu_custom_call.1
= control target key start
LH: loop header
LB: loop body
LE: loop exit
PB: predicated region body
PF: predicated region fallthrough
CT: control target
= control target key end

     0   :  { %s2117_s0 = inlined_call_operand.vmem [shape: f32[128,128], index: 0, kind: input, shape index: {}]   ;;  %s2118_s1 = inlined_call_operand.vmem [shape: f32[128,64], index: 1, kind: input, shape index: {}]   ;;  %s2119_s2 = inlined_call_operand.vmem [shape: f32[64,32], index: 2, kind: input, shape index: {}]   ;;  %s2120_s3 = inlined_call_operand.vmem [shape: f32[128,32], index: 3, kind: output, shape index: {}]  }
   0x1   :  { %v1712_v0 = vld [vmem:[%s2117_s0] sm:$0xff]  ;;  %v1717_v1 = vld [vmem:[%s2117_s0 + $0x8] sm:$0xff]  ;;  %v1722_v2 = vld [vmem:[%s2117_s0 + $0x10] sm:$0xff] }
   0x2   :  { %v1727_v3 = vld [vmem:[%s2117_s0 + $0x18] sm:$0xff]  ;;  %v1732_v4 = vld [vmem:[%s2117_s0 + $0x20] sm:$0xff]  ;;  %v1737_v5 = vld [vmem:[%s2117_s0 + $0x28] sm:$0xff] }
   0x3   :  { %v1742_v6 = vld [vmem:[%s2117_s0 + $0x30] sm:$0xff]  ;;  %v1747_v7 = vld [vmem:[%s2117_s0 + $0x38] sm:$0xff]  ;;  %v1752_v8 = vld [vmem:[%s2117_s0 + $0x40] sm:$0xff] }
   0x4   :  { %v1757_v9 = vld [vmem:[%s2117_s0 + $0x48] sm:$0xff]  ;;  %v1762_v10 = vld [vmem:[%s2117_s0 + $0x50] sm:$0xff]  ;;  %v1767_v11 = vld [vmem:[%s2117_s0 + $0x58] sm:$0xff] }
   0x5   :  { %v1772_v12 = vld [vmem:[%s2117_s0 + $0x60] sm:$0xff]  ;;  %v1777_v13 = vld [vmem:[%s2117_s0 + $0x68] sm:$0xff]  ;;  %v1782_v14 = vld [vmem:[%s2117_s0 + $0x70] sm:$0xff] }
   0x6   :  { %v1787_v15 = vld [vmem:[%s2117_s0 + $0x78] sm:$0xff] }
   0x7   :  { %79 = vsyncadd [#allocation5], 2048  ;;  %v113_v16 = vld [vmem:[%s2118_s1] sm:$0xff]  ;;  %v115_v17 = vld [vmem:[%s2118_s1 + $0x8] sm:$0xff] }
   0x8   :  { %v117_v18 = vld [vmem:[%s2118_s1 + $0x10] sm:$0xff]  ;;  %v119_v19 = vld [vmem:[%s2118_s1 + $0x18] sm:$0xff]  ;;  %v121_v20 = vld [vmem:[%s2118_s1 + $0x20] sm:$0xff] }
   0x9   :  { %v123_v21 = vld [vmem:[%s2118_s1 + $0x28] sm:$0xff]  ;;  %v125_v22 = vld [vmem:[%s2118_s1 + $0x30] sm:$0xff]  ;;  %v127_v23 = vld [vmem:[%s2118_s1 + $0x38] sm:$0xff] }
   0xa   :  { %v129_v24 = vld [vmem:[%s2118_s1 + $0x40] sm:$0xff]  ;;  %v131_v25 = vld [vmem:[%s2118_s1 + $0x48] sm:$0xff]  ;;  %v133_v26 = vld [vmem:[%s2118_s1 + $0x50] sm:$0xff] }
   0xb   :  { %v135_v27 = vld [vmem:[%s2118_s1 + $0x58] sm:$0xff]  ;;  %v137_v28 = vld [vmem:[%s2118_s1 + $0x60] sm:$0xff]  ;;  %v139_v29 = vld [vmem:[%s2118_s1 + $0x68] sm:$0xff] }
   0xc   :  { %v141_v30 = vld [vmem:[%s2118_s1 + $0x70] sm:$0xff]  ;;  %v143_v31 = vld [vmem:[%s2118_s1 + $0x78] sm:$0xff] }
   0xd   :  { %152 = vsyncadd [#allocation5 + $0x1], 2048  ;;  %v186_v32 = vld [vmem:[%s2119_s2] sm:$0xff]  ;;  %v188_v33 = vld [vmem:[%s2119_s2 + $0x8] sm:$0xff] }
   0xe   :  { %v190_v34 = vld [vmem:[%s2119_s2 + $0x10] sm:$0xff]  ;;  %v192_v35 = vld [vmem:[%s2119_s2 + $0x18] sm:$0xff]  ;;  %v194_v36 = vld [vmem:[%s2119_s2 + $0x20] sm:$0xff] }
   0xf   :  { %v196_v37 = vld [vmem:[%s2119_s2 + $0x28] sm:$0xff]  ;;  %v198_v38 = vld [vmem:[%s2119_s2 + $0x30] sm:$0xff]  ;;  %v200_v39 = vld [vmem:[%s2119_s2 + $0x38] sm:$0xff] }
  0x10   :  { %209 = vsyncadd [#allocation5 + $0x2], 1024 }
  0x11   :  { %1683 = dma.done.wait [#allocation5 + $0x1], 2048 }
  0x12   :  { %1684 = vsyncadd [#allocation5 + $0x1], 4294965248  ;;  %v1491_v40 = vpack.c.bf16 %v188_v33, %v186_v32  ;;  %v1495_v41 = vpack.c.bf16 %v192_v35, %v190_v34 }
  0x13   :  { %1685 = dma.done.wait [#allocation5 + $0x2], 1024 }
  0x14   :  { %1686 = vsyncadd [#allocation5 + $0x2], 4294966272  ;;  %vm240_vm0 = vcmask 523264   ;;  %1492 = vmatprep.subr.bf16.mxu0 %v1491_v40  ;;  %v1499_v42 = vpack.c.bf16 %v196_v37, %v194_v36  ;;  %v1503_v43 = vpack.c.bf16 %v200_v39, %v198_v38  ;;  %1355 = vmatprep.mubr.f32.mxu1 %v1712_v0 }
  0x15   :  { %1299 = vmatprep.mubr.msk.f32.mxu0 %vm240_vm0, %v113_v16  ;;  %1494 = vmatpush3.bf16.msra.mxu0 %v1491_v40 }
  0x16   :  { %1496 = vmatprep.subr.bf16.mxu0 %v1495_v41 }
  0x19   :  { %1498 = vmatpush3.bf16.msra.mxu0 %v1495_v41 }
  0x1a   :  { %1500 = vmatprep.subr.bf16.mxu0 %v1499_v42 }
  0x1d   :  { %1502 = vmatpush3.bf16.msra.mxu0 %v1499_v42 }
  0x1e   :  { %1504 = vmatprep.subr.bf16.mxu0 %v1503_v43 }
  0x21   :  { %1506 = vmatpush3.bf16.msra.mxu0 %v1503_v43 }
  0x24   :  { %1300 = vmatmul.mubr.msk.f32.vlgmr.msra.gmra.mrb[0].mxu0 %vm240_vm0, %v115_v17 }
  0x25   :  { %1302 = vmatprep.mubr.msk.f32.mxu0 %vm240_vm0, %v117_v18 }
  0x28   :  { %1303 = vmatmul.mubr.msk.f32.gmra.mrb[2].mxu0 %vm240_vm0, %v119_v19 }
  0x29   :  { %1305 = vmatprep.mubr.msk.f32.mxu0 %vm240_vm0, %v121_v20 }
  0x2c   :  { %1306 = vmatmul.mubr.msk.f32.gmra.mrb[4].mxu0 %vm240_vm0, %v123_v21 }
  0x2d   :  { %1308 = vmatprep.mubr.msk.f32.mxu0 %vm240_vm0, %v125_v22 }
  0x30   :  { %1309 = vmatmul.mubr.msk.f32.gmra.mrb[6].mxu0 %vm240_vm0, %v127_v23 }
  0x31   :  { %1311 = vmatprep.mubr.msk.f32.mxu0 %vm240_vm0, %v129_v24 }
  0x34   :  { %1312 = vmatmul.mubr.msk.f32.gmra.mrb[8].mxu0 %vm240_vm0, %v131_v25 }
  0x35   :  { %1314 = vmatprep.mubr.msk.f32.mxu0 %vm240_vm0, %v133_v26 }
  0x38   :  { %1315 = vmatmul.mubr.msk.f32.gmra.mrb[10].mxu0 %vm240_vm0, %v135_v27 }
  0x39   :  { %1317 = vmatprep.mubr.msk.f32.mxu0 %vm240_vm0, %v137_v28 }
  0x3c   :  { %1318 = vmatmul.mubr.msk.f32.gmra.mrb[12].mxu0 %vm240_vm0, %v139_v29 }
  0x3d   :  { %1320 = vmatprep.mubr.msk.f32.mxu0 %vm240_vm0, %v141_v30 }
  0x40   :  { %1321 = vmatmul.mubr.msk.f32.gmra.mrb[14].mxu0 %vm240_vm0, %v143_v31 }
  0xf7   :  { %v1301_v44 = vpop.f32.mrb[0].mxu0 }
  0xf8   :  { %v355_v45 = vpop.f32.mrb[1].mxu0 }
  0xf9   :  { %v1507_v60 = vpack.c.bf16 %v1301_v44, %v355_v45 }
  0xfb   :  { %v1304_v46 = vpop.f32.mrb[2].mxu0 }
  0xfc   :  { %v365_v47 = vpop.f32.mrb[3].mxu0 }
  0xfd   :  { %v1511_v61 = vpack.c.bf16 %v1304_v46, %v365_v47 }
  0xff   :  { %v1307_v48 = vpop.f32.mrb[4].mxu0 }
 0x100   :  { %v375_v49 = vpop.f32.mrb[5].mxu0 }
 0x103   :  { %v1310_v50 = vpop.f32.mrb[6].mxu0 }
 0x104   :  { %v385_v51 = vpop.f32.mrb[7].mxu0 }
 0x107   :  { %v1313_v52 = vpop.f32.mrb[8].mxu0 }
 0x108   :  { %v395_v53 = vpop.f32.mrb[9].mxu0 }
 0x10b   :  { %v1316_v54 = vpop.f32.mrb[10].mxu0 }
 0x10c   :  { %v405_v55 = vpop.f32.mrb[11].mxu0 }
 0x10f   :  { %v1319_v56 = vpop.f32.mrb[12].mxu0 }
 0x110   :  { %v415_v57 = vpop.f32.mrb[13].mxu0 }
 0x113   :  { %v1322_v58 = vpop.f32.mrb[14].mxu0 }
 0x114   :  { %v425_v59 = vpop.f32.mrb[15].mxu0 }
 0x115   :  { %1687 = dma.done.wait [#allocation5], 2048 }
 0x116   :  { %1688 = vsyncadd [#allocation5], 4294965248  ;;  %1411 = vmatprep.mubr.f32.mxu0 %v1712_v0  ;;  %1508 = vmatprep.subr.bf16.mxu1 %v1507_v60  ;;  %v1515_v62 = vpack.c.bf16 %v1307_v48, %v375_v49  ;;  %v1519_v63 = vpack.c.bf16 %v1310_v50, %v385_v51  ;;  %v1523_v16 = vpack.c.bf16 %v1313_v52, %v395_v53  ;;  %vm887_vm1 = vcmask 261120  }
 0x117   :  { %1510 = vmatpush3.bf16.msra.mxu1 %v1507_v60  ;;  %v1527_v17 = vpack.c.bf16 %v1316_v54, %v405_v55  ;;  %v1531_v18 = vpack.c.bf16 %v1319_v56, %v415_v57  ;;  %v1535_v19 = vpack.c.bf16 %v1322_v58, %v425_v59 }
 0x118   :  { %1512 = vmatprep.subr.bf16.mxu1 %v1511_v61 }
 0x11b   :  { %1514 = vmatpush3.bf16.msra.mxu1 %v1511_v61 }
 0x11c   :  { %1516 = vmatprep.subr.bf16.mxu1 %v1515_v62 }
 0x11f   :  { %1518 = vmatpush3.bf16.msra.mxu1 %v1515_v62 }
 0x120   :  { %1520 = vmatprep.subr.bf16.mxu1 %v1519_v63 }
 0x123   :  { %1522 = vmatpush3.bf16.msra.mxu1 %v1519_v63 }
 0x124   :  { %1524 = vmatprep.subr.bf16.mxu1 %v1523_v16 }
 0x127   :  { %1526 = vmatpush3.bf16.msra.mxu1 %v1523_v16 }
 0x128   :  { %1528 = vmatprep.subr.bf16.mxu1 %v1527_v17 }
 0x12b   :  { %1530 = vmatpush3.bf16.msra.mxu1 %v1527_v17 }
 0x12c   :  { %1532 = vmatprep.subr.bf16.mxu1 %v1531_v18 }
 0x12f   :  { %1534 = vmatpush3.bf16.msra.mxu1 %v1531_v18 }
 0x130   :  { %1536 = vmatprep.subr.bf16.mxu1 %v1535_v19 }
 0x133   :  { %1538 = vmatpush3.bf16.msra.mxu1 %v1535_v19 }
 0x136   :  { %1356 = vmatmul.mubr.f32.vlgmr.msra.gmra.mrb[0].mxu1 %v1717_v1 }
 0x137   :  { %1358 = vmatprep.mubr.f32.mxu1 %v1722_v2 }
 0x13a   :  { %1359 = vmatmul.mubr.f32.gmra.mrb[2].mxu1 %v1727_v3 }
 0x13b   :  { %1361 = vmatprep.mubr.f32.mxu1 %v1732_v4 }
 0x13e   :  { %1362 = vmatmul.mubr.f32.gmra.mrb[4].mxu1 %v1737_v5 }
 0x13f   :  { %1364 = vmatprep.mubr.f32.mxu1 %v1742_v6 }
 0x142   :  { %1365 = vmatmul.mubr.f32.gmra.mrb[6].mxu1 %v1747_v7 }
 0x143   :  { %1367 = vmatprep.mubr.f32.mxu1 %v1752_v8 }
 0x146   :  { %1368 = vmatmul.mubr.f32.gmra.mrb[8].mxu1 %v1757_v9 }
 0x147   :  { %1370 = vmatprep.mubr.f32.mxu1 %v1762_v10 }
 0x14a   :  { %1371 = vmatmul.mubr.f32.gmra.mrb[10].mxu1 %v1767_v11 }
 0x14b   :  { %1373 = vmatprep.mubr.f32.mxu1 %v1772_v12 }
 0x14e   :  { %1374 = vmatmul.mubr.f32.gmra.mrb[12].mxu1 %v1777_v13 }
 0x14f   :  { %1376 = vmatprep.mubr.f32.mxu1 %v1782_v14 }
 0x152   :  { %1377 = vmatmul.mubr.f32.gmra.mrb[14].mxu1 %v1787_v15 }
 0x153   :  { %1473 = vmatprep.mubr.f32.mxu1 %v1732_v4 }
 0x209   :  { %v1357_v20 = vpop.f32.mrb[0].mxu1 }
 0x20a   :  { %v518_v21 = vpop.f32.mrb[1].mxu1 }
 0x20b   :  { %v1539_v22 = vpack.c.bf16 %v1357_v20, %v518_v21 }
 0x20d   :  { %v1360_v23 = vpop.f32.mrb[2].mxu1  ;;  %1540 = vmatprep.subr.bf16.mxu0 %v1539_v22 }
 0x20e   :  { %v528_v24 = vpop.f32.mrb[3].mxu1  ;;  %1542 = vmatpush3.bf16.msra.mxu0 %v1539_v22 }
 0x20f   :  { %v1543_v25 = vpack.c.bf16 %v1360_v23, %v528_v24 }
 0x211   :  { %v1363_v26 = vpop.f32.mrb[4].mxu1  ;;  %1544 = vmatprep.subr.bf16.mxu0 %v1543_v25 }
 0x212   :  { %v538_v27 = vpop.f32.mrb[5].mxu1  ;;  %1546 = vmatpush3.bf16.msra.mxu0 %v1543_v25 }
 0x213   :  { %v1547_v28 = vpack.c.bf16 %v1363_v26, %v538_v27 }
 0x215   :  { %v1366_v29 = vpop.f32.mrb[6].mxu1  ;;  %1548 = vmatprep.subr.bf16.mxu0 %v1547_v28 }
 0x216   :  { %v548_v30 = vpop.f32.mrb[7].mxu1  ;;  %1550 = vmatpush3.bf16.msra.mxu0 %v1547_v28 }
 0x217   :  { %v1551_v31 = vpack.c.bf16 %v1366_v29, %v548_v30 }
 0x219   :  { %v1369_v32 = vpop.f32.mrb[8].mxu1  ;;  %1552 = vmatprep.subr.bf16.mxu0 %v1551_v31 }
 0x21a   :  { %v558_v33 = vpop.f32.mrb[9].mxu1  ;;  %1554 = vmatpush3.bf16.msra.mxu0 %v1551_v31 }
 0x21b   :  { %v1555_v34 = vpack.c.bf16 %v1369_v32, %v558_v33 }
 0x21d   :  { %v1372_v35 = vpop.f32.mrb[10].mxu1  ;;  %1556 = vmatprep.subr.bf16.mxu0 %v1555_v34 }
 0x21e   :  { %v568_v36 = vpop.f32.mrb[11].mxu1  ;;  %1558 = vmatpush3.bf16.msra.mxu0 %v1555_v34 }
 0x21f   :  { %v1559_v37 = vpack.c.bf16 %v1372_v35, %v568_v36 }
 0x221   :  { %v1375_v38 = vpop.f32.mrb[12].mxu1  ;;  %1560 = vmatprep.subr.bf16.mxu0 %v1559_v37 }
 0x222   :  { %v578_v39 = vpop.f32.mrb[13].mxu1  ;;  %1562 = vmatpush3.bf16.msra.mxu0 %v1559_v37 }
 0x223   :  { %v1563_v40 = vpack.c.bf16 %v1375_v38, %v578_v39 }
 0x225   :  { %v1378_v41 = vpop.f32.mrb[14].mxu1  ;;  %1564 = vmatprep.subr.bf16.mxu0 %v1563_v40 }
 0x226   :  { %v588_v42 = vpop.f32.mrb[15].mxu1  ;;  %1566 = vmatpush3.bf16.msra.mxu0 %v1563_v40 }
 0x227   :  { %v1567_v43 = vpack.c.bf16 %v1378_v41, %v588_v42 }
 0x229   :  { %1568 = vmatprep.subr.bf16.mxu0 %v1567_v43 }
 0x22a   :  { %1570 = vmatpush3.bf16.msra.mxu0 %v1567_v43 }
 0x22d   :  { %1412 = vmatmul.mubr.f32.vlgmr.msra.gmra.mrb[16].mxu0 %v1717_v1 }
 0x22e   :  { %1414 = vmatprep.mubr.f32.mxu0 %v1722_v2 }
 0x231   :  { %1415 = vmatmul.mubr.f32.gmra.mrb[18].mxu0 %v1727_v3 }
 0x232   :  { %1417 = vmatprep.mubr.f32.mxu0 %v1732_v4 }
 0x235   :  { %1418 = vmatmul.mubr.f32.gmra.mrb[20].mxu0 %v1737_v5 }
 0x236   :  { %1420 = vmatprep.mubr.f32.mxu0 %v1742_v6 }
 0x239   :  { %1421 = vmatmul.mubr.f32.gmra.mrb[22].mxu0 %v1747_v7 }
 0x23a   :  { %1423 = vmatprep.mubr.f32.mxu0 %v1752_v8 }
 0x23d   :  { %1424 = vmatmul.mubr.f32.gmra.mrb[24].mxu0 %v1757_v9 }
 0x23e   :  { %1426 = vmatprep.mubr.f32.mxu0 %v1762_v10 }
 0x241   :  { %1427 = vmatmul.mubr.f32.gmra.mrb[26].mxu0 %v1767_v11 }
 0x242   :  { %1429 = vmatprep.mubr.f32.mxu0 %v1772_v12 }
 0x245   :  { %1430 = vmatmul.mubr.f32.gmra.mrb[28].mxu0 %v1777_v13 }
 0x246   :  { %1432 = vmatprep.mubr.f32.mxu0 %v1782_v14 }
 0x249   :  { %1433 = vmatmul.mubr.f32.gmra.mrb[30].mxu0 %v1787_v15 }
 0x24a   :  { %1467 = vmatprep.mubr.f32.mxu0 %v1712_v0 }
 0x300   :  { %v1413_v4 = vpop.f32.mrb[16].mxu0 }
 0x301   :  { %v663_v44 = vpop.f32.mrb[17].mxu0 }
 0x302   :  { %v1571_v45 = vpack.c.bf16 %v1413_v4, %v663_v44 }
 0x304   :  { %v1416_v46 = vpop.f32.mrb[18].mxu0  ;;  %1572 = vmatprep.subr.bf16.mxu0 %v1571_v45  ;;  %1603 = vmatprep.subr.bf16.mxu1 %v1571_v45 }
 0x305   :  { %v673_v47 = vpop.f32.mrb[19].mxu0  ;;  %1574 = vmatpush3.bf16.msra.mxu0 %v1571_v45  ;;  %1611 = vmatpush3.bf16.msra.mxu1 %v1571_v45 }
 0x306   :  { %v1575_v48 = vpack.c.bf16 %v1416_v46, %v673_v47 }
 0x308   :  { %v1419_v49 = vpop.f32.mrb[20].mxu0  ;;  %1576 = vmatprep.subr.bf16.mxu0 %v1575_v48  ;;  %1604 = vmatprep.subr.bf16.mxu1 %v1575_v48 }
 0x309   :  { %v683_v50 = vpop.f32.mrb[21].mxu0  ;;  %1578 = vmatpush3.bf16.msra.mxu0 %v1575_v48  ;;  %1612 = vmatpush3.bf16.msra.mxu1 %v1575_v48 }
 0x30a   :  { %v1579_v51 = vpack.c.bf16 %v1419_v49, %v683_v50 }
 0x30c   :  { %v1422_v52 = vpop.f32.mrb[22].mxu0  ;;  %1580 = vmatprep.subr.bf16.mxu0 %v1579_v51  ;;  %1605 = vmatprep.subr.bf16.mxu1 %v1579_v51 }
 0x30d   :  { %v693_v0 = vpop.f32.mrb[23].mxu0  ;;  %1582 = vmatpush3.bf16.msra.mxu0 %v1579_v51  ;;  %1613 = vmatpush3.bf16.msra.mxu1 %v1579_v51 }
 0x30e   :  { %v1583_v53 = vpack.c.bf16 %v1422_v52, %v693_v0 }
 0x310   :  { %v1425_v54 = vpop.f32.mrb[24].mxu0  ;;  %1584 = vmatprep.subr.bf16.mxu0 %v1583_v53  ;;  %1606 = vmatprep.subr.bf16.mxu1 %v1583_v53 }
 0x311   :  { %v703_v55 = vpop.f32.mrb[25].mxu0  ;;  %1586 = vmatpush3.bf16.msra.mxu0 %v1583_v53  ;;  %1614 = vmatpush3.bf16.msra.mxu1 %v1583_v53 }
 0x312   :  { %v1587_v56 = vpack.c.bf16 %v1425_v54, %v703_v55 }
 0x314   :  { %v1428_v57 = vpop.f32.mrb[26].mxu0  ;;  %1588 = vmatprep.subr.bf16.mxu0 %v1587_v56  ;;  %1607 = vmatprep.subr.bf16.mxu1 %v1587_v56 }
 0x315   :  { %v713_v58 = vpop.f32.mrb[27].mxu0  ;;  %1590 = vmatpush3.bf16.msra.mxu0 %v1587_v56  ;;  %1615 = vmatpush3.bf16.msra.mxu1 %v1587_v56 }
 0x316   :  { %v1591_v59 = vpack.c.bf16 %v1428_v57, %v713_v58 }
 0x318   :  { %v1431_v60 = vpop.f32.mrb[28].mxu0  ;;  %1592 = vmatprep.subr.bf16.mxu0 %v1591_v59  ;;  %1608 = vmatprep.subr.bf16.mxu1 %v1591_v59 }
 0x319   :  { %v723_v61 = vpop.f32.mrb[29].mxu0  ;;  %1594 = vmatpush3.bf16.msra.mxu0 %v1591_v59  ;;  %1616 = vmatpush3.bf16.msra.mxu1 %v1591_v59 }
 0x31a   :  { %v1595_v62 = vpack.c.bf16 %v1431_v60, %v723_v61 }
 0x31c   :  { %v1434_v63 = vpop.f32.mrb[30].mxu0  ;;  %1596 = vmatprep.subr.bf16.mxu0 %v1595_v62  ;;  %1609 = vmatprep.subr.bf16.mxu1 %v1595_v62 }
 0x31d   :  { %v733_v16 = vpop.f32.mrb[31].mxu0  ;;  %1598 = vmatpush3.bf16.msra.mxu0 %v1595_v62  ;;  %1617 = vmatpush3.bf16.msra.mxu1 %v1595_v62 }
 0x31e   :  { %v1599_v17 = vpack.c.bf16 %v1434_v63, %v733_v16 }
 0x320   :  { %1600 = vmatprep.subr.bf16.mxu0 %v1599_v17  ;;  %1610 = vmatprep.subr.bf16.mxu1 %v1599_v17 }
 0x321   :  { %1602 = vmatpush3.bf16.msra.mxu0 %v1599_v17  ;;  %1618 = vmatpush3.bf16.msra.mxu1 %v1599_v17 }
 0x324   :  { %1468 = vmatmul.mubr.f32.vlgmr.msra.gmra.mrb[32].mxu0 %v1717_v1  ;;  %1474 = vmatmul.mubr.f32.vlgmr.msra.gmra.mrb[16].mxu1 %v1737_v5 }
 0x325   :  { %1470 = vmatprep.mubr.f32.mxu0 %v1722_v2  ;;  %1476 = vmatprep.mubr.f32.mxu1 %v1742_v6 }
 0x328   :  { %1471 = vmatmul.mubr.f32.gmra.mrb[34].mxu0 %v1727_v3  ;;  %1477 = vmatmul.mubr.f32.gmra.mrb[18].mxu1 %v1747_v7 }
 0x329   :  { %1479 = vmatprep.mubr.f32.mxu1 %v1752_v8 }
 0x32c   :  { %1480 = vmatmul.mubr.f32.gmra.mrb[20].mxu1 %v1757_v9 }
 0x32d   :  { %1482 = vmatprep.mubr.f32.mxu1 %v1762_v10 }
 0x330   :  { %1483 = vmatmul.mubr.f32.gmra.mrb[22].mxu1 %v1767_v11 }
 0x331   :  { %1485 = vmatprep.mubr.f32.mxu1 %v1772_v12 }
 0x334   :  { %1486 = vmatmul.mubr.f32.gmra.mrb[24].mxu1 %v1777_v13 }
 0x335   :  { %1488 = vmatprep.mubr.f32.mxu1 %v1782_v14 }
 0x338   :  { %1489 = vmatmul.mubr.f32.gmra.mrb[26].mxu1 %v1787_v15 }
 0x3f7   :  { %v1469_v1 = vpop.f32.mrb[32].mxu0  ;;  %v1475_v2 = vpop.f32.mrb[16].mxu1 }
 0x3f8   :  { %v808_v3 = vpop.f32.mrb[33].mxu0  ;;  %v828_v5 = vpop.f32.mrb[17].mxu1  ;;  %v903_v6 = vsel %vm887_vm1, %v1475_v2, -inf  ;;  %v891_v7 = vsel %vm887_vm1, %v1469_v1, -inf }
 0x3f9   :  { %904 = vmax.xlane.f32.xlu1 %v903_v6  ;;  %892 = vmax.xlane.f32.xlu0 %v891_v7  ;;  %v888_v11 = vsel %vm887_vm1, %v808_v3, -inf  ;;  %v900_v18 = vsel %vm887_vm1, %v828_v5, -inf }
 0x3fb   :  { %v1472_v8 = vpop.f32.mrb[34].mxu0  ;;  %v1478_v9 = vpop.f32.mrb[18].mxu1 }
 0x3fc   :  { %v1927_v10 = vpop.f32.mrb[35].mxu0  ;;  %v897_v12 = vsel %vm887_vm1, %v1472_v8, -inf  ;;  %v838_v13 = vpop.f32.mrb[19].mxu1  ;;  %v909_v14 = vsel %vm887_vm1, %v1478_v9, -inf }
 0x3fd   :  { %889 = vmax.xlane.f32.xlu0 %v888_v11  ;;  %898 = vmax.xlane.f32.xlu1 %v897_v12  ;;  %v906_v21 = vsel %vm887_vm1, %v838_v13, -inf  ;;  %v894_v22 = vsel %vm887_vm1, %v1927_v10, -inf }
 0x3ff   :  { %v1932_v15 = vpop.f32.mrb[20].mxu1 }
 0x400   :  { %v848_v19 = vpop.f32.mrb[21].mxu1  ;;  %v915_v25 = vsel %vm887_vm1, %v1932_v15, -inf }
 0x401   :  { %901 = vmax.xlane.f32.xlu0 %v900_v18  ;;  %910 = vmax.xlane.f32.xlu1 %v909_v14  ;;  %v912_v24 = vsel %vm887_vm1, %v848_v19, -inf }
 0x403   :  { %v1935_v20 = vpop.f32.mrb[22].mxu1 }
 0x404   :  { %v1940_v23 = vpop.f32.mrb[23].mxu1  ;;  %v921_v29 = vsel %vm887_vm1, %v1935_v20, -inf }
 0x405   :  { %907 = vmax.xlane.f32.xlu0 %v906_v21  ;;  %895 = vmax.xlane.f32.xlu1 %v894_v22  ;;  %v918_v28 = vsel %vm887_vm1, %v1940_v23, -inf }
 0x407   :  { %v1945_v26 = vpop.f32.mrb[24].mxu1 }
 0x408   :  { %v1947_v27 = vpop.f32.mrb[25].mxu1  ;;  %v927_v33 = vsel %vm887_vm1, %v1945_v26, -inf }
 0x409   :  { %913 = vmax.xlane.f32.xlu0 %v912_v24  ;;  %916 = vmax.xlane.f32.xlu1 %v915_v25  ;;  %v924_v32 = vsel %vm887_vm1, %v1947_v27, -inf }
 0x40b   :  { %v1953_v30 = vpop.f32.mrb[26].mxu1 }
 0x40c   :  { %v1955_v31 = vpop.f32.mrb[27].mxu1  ;;  %v933_v35 = vsel %vm887_vm1, %v1953_v30, -inf }
 0x40d   :  { %919 = vmax.xlane.f32.xlu0 %v918_v28  ;;  %922 = vmax.xlane.f32.xlu1 %v921_v29  ;;  %v930_v34 = vsel %vm887_vm1, %v1955_v31, -inf }
 0x411   :  { %925 = vmax.xlane.f32.xlu0 %v924_v32  ;;  %928 = vmax.xlane.f32.xlu1 %v927_v33 }
 0x415   :  { %931 = vmax.xlane.f32.xlu0 %v930_v34  ;;  %934 = vmax.xlane.f32.xlu1 %v933_v35 }
 0x486   :  { %v905_v36 = vpop.xlane.xlu1 %904  ;;  %v893_v37 = vpop.xlane.xlu0 %892 }
 0x487   :  { %v1965_v38 = vsub.f32 %v1475_v2, %v905_v36  ;;  %v1967_v39 = vsub.f32 %v1469_v1, %v893_v37 }
 0x489   :  { %v954_v40 = vmul.f32 1.442695, %v1967_v39  ;;  %v962_v41 = vmul.f32 1.442695, %v1965_v38 }
 0x48a   :  { %v890_v42 = vpop.xlane.xlu0 %889  ;;  %v899_v43 = vpop.xlane.xlu1 %898 }
 0x48b   :  { %v1971_v4 = vsub.f32 %v808_v3, %v890_v42  ;;  %v1973_v44 = vsub.f32 %v1472_v8, %v899_v43  ;;  %1619 = vpow2.f32 %v954_v40 }
 0x48c   :  { %1621 = vpow2.f32 %v962_v41 }
 0x48d   :  { %v952_v45 = vmul.f32 1.442695, %v1971_v4  ;;  %v958_v46 = vmul.f32 1.442695, %v1973_v44 }
 0x48e   :  { %v902_v47 = vpop.xlane.xlu0 %901  ;;  %v911_v48 = vpop.xlane.xlu1 %910 }
 0x48f   :  { %1623 = vpow2.f32 %v952_v45  ;;  %v1977_v49 = vsub.f32 %v828_v5, %v902_v47  ;;  %v1979_v50 = vsub.f32 %v1478_v9, %v911_v48 }
 0x490   :  { %1625 = vpow2.f32 %v958_v46 }
 0x491   :  { %v960_v51 = vmul.f32 1.442695, %v1977_v49  ;;  %v966_v52 = vmul.f32 1.442695, %v1979_v50 }
 0x492   :  { %v908_v0 = vpop.xlane.xlu0 %907  ;;  %v896_v53 = vpop.xlane.xlu1 %895 }
 0x493   :  { %1627 = vpow2.f32 %v960_v51  ;;  %v1983_v54 = vsub.f32 %v838_v13, %v908_v0  ;;  %v1986_v55 = vsub.f32 %v1927_v10, %v896_v53 }
 0x494   :  { %1629 = vpow2.f32 %v966_v52 }
 0x495   :  { %v956_v56 = vmul.f32 1.442695, %v1986_v55  ;;  %v1620_v57 = vpop.eup %1619  ;;  %v964_v58 = vmul.f32 1.442695, %v1983_v54 }
 0x496   :  { %v914_v59 = vpop.xlane.xlu0 %913  ;;  %v917_v60 = vpop.xlane.xlu1 %916  ;;  %v987_v63 = vsel %vm887_vm1, %v1620_v57, 0.0 }
 0x497   :  { %v1990_v61 = vsub.f32 %v848_v19, %v914_v59  ;;  %v1993_v62 = vsub.f32 %v1932_v15, %v917_v60  ;;  %v1622_v16 = vpop.eup %1621  ;;  %1631 = vpow2.f32 %v956_v56  ;;  %988 = vadd.xlane.f32.xlu1 %v987_v63 }
 0x498   :  { %1633 = vpow2.f32 %v964_v58  ;;  %v999_v9 = vsel %vm887_vm1, %v1622_v16, 0.0 }
 0x499   :  { %v1624_v17 = vpop.eup %1623  ;;  %v970_v1 = vmul.f32 1.442695, %v1993_v62  ;;  %v968_v2 = vmul.f32 1.442695, %v1990_v61 }
 0x49a   :  { %v920_v3 = vpop.xlane.xlu0 %919  ;;  %v923_v5 = vpop.xlane.xlu1 %922  ;;  %v984_v6 = vsel %vm887_vm1, %v1624_v17, 0.0 }
 0x49b   :  { %v2000_v7 = vsub.f32 %v1940_v23, %v920_v3  ;;  %v2003_v8 = vsub.f32 %v1935_v20, %v923_v5  ;;  %985 = vadd.xlane.f32.xlu0 %v984_v6  ;;  %v1626_v10 = vpop.eup %1625  ;;  %1635 = vpow2.f32 %v970_v1  ;;  %1000 = vadd.xlane.f32.xlu1 %v999_v9 }
 0x49c   :  { %1637 = vpow2.f32 %v968_v2  ;;  %v993_v21 = vsel %vm887_vm1, %v1626_v10, 0.0 }
 0x49d   :  { %v1628_v11 = vpop.eup %1627  ;;  %v974_v12 = vmul.f32 1.442695, %v2003_v8  ;;  %v972_v13 = vmul.f32 1.442695, %v2000_v7 }
 0x49e   :  { %v926_v14 = vpop.xlane.xlu0 %925  ;;  %v929_v15 = vpop.xlane.xlu1 %928  ;;  %v996_v18 = vsel %vm887_vm1, %v1628_v11, 0.0 }
 0x49f   :  { %v2010_v19 = vsub.f32 %v1947_v27, %v926_v14  ;;  %v2013_v20 = vsub.f32 %v1945_v26, %v929_v15  ;;  %997 = vadd.xlane.f32.xlu0 %v996_v18  ;;  %v1630_v22 = vpop.eup %1629  ;;  %1639 = vpow2.f32 %v974_v12  ;;  %994 = vadd.xlane.f32.xlu1 %v993_v21 }
 0x4a0   :  { %1641 = vpow2.f32 %v972_v13  ;;  %v1005_v32 = vsel %vm887_vm1, %v1630_v22, 0.0 }
 0x4a1   :  { %v978_v23 = vmul.f32 1.442695, %v2013_v20  ;;  %v1632_v24 = vpop.eup %1631  ;;  %v976_v25 = vmul.f32 1.442695, %v2010_v19 }
 0x4a2   :  { %v932_v28 = vpop.xlane.xlu0 %931  ;;  %v935_v29 = vpop.xlane.xlu1 %934  ;;  %v990_v33 = vsel %vm887_vm1, %v1632_v24, 0.0 }
 0x4a3   :  { %v2019_v27 = vsub.f32 %v1955_v31, %v932_v28  ;;  %v2022_v26 = vsub.f32 %v1953_v30, %v935_v29  ;;  %v1634_v34 = vpop.eup %1633  ;;  %1643 = vpow2.f32 %v978_v23  ;;  %1006 = vadd.xlane.f32.xlu1 %v1005_v32  ;;  %991 = vadd.xlane.f32.xlu0 %v990_v33 }
 0x4a4   :  { %1645 = vpow2.f32 %v976_v25  ;;  %v1002_v31 = vsel %vm887_vm1, %v1634_v34, 0.0 }
 0x4a5   :  { %v982_v35 = vmul.f32 1.442695, %v2022_v26  ;;  %v1636_v36 = vpop.eup %1635  ;;  %v980_v37 = vmul.f32 1.442695, %v2019_v27 }
 0x4a6   :  { %v1011_v40 = vsel %vm887_vm1, %v1636_v36, 0.0  ;;  %v1638_v30 = vpop.eup %1637 }
 0x4a7   :  { %1647 = vpow2.f32 %v982_v35  ;;  %1003 = vadd.xlane.f32.xlu0 %v1002_v31  ;;  %1012 = vadd.xlane.f32.xlu1 %v1011_v40  ;;  %v1008_v42 = vsel %vm887_vm1, %v1638_v30, 0.0 }
 0x4a8   :  { %1649 = vpow2.f32 %v980_v37 }
 0x4a9   :  { %v1640_v41 = vpop.eup %1639 }
 0x4aa   :  { %v1017_v43 = vsel %vm887_vm1, %v1640_v41, 0.0  ;;  %v1642_v45 = vpop.eup %1641 }
 0x4ab   :  { %1009 = vadd.xlane.f32.xlu0 %v1008_v42  ;;  %1018 = vadd.xlane.f32.xlu1 %v1017_v43  ;;  %v1014_v47 = vsel %vm887_vm1, %v1642_v45, 0.0 }
 0x4ad   :  { %v1644_v46 = vpop.eup %1643 }
 0x4ae   :  { %v1023_v48 = vsel %vm887_vm1, %v1644_v46, 0.0  ;;  %v1646_v51 = vpop.eup %1645 }
 0x4af   :  { %1015 = vadd.xlane.f32.xlu0 %v1014_v47  ;;  %1024 = vadd.xlane.f32.xlu1 %v1023_v48  ;;  %v1020_v0 = vsel %vm887_vm1, %v1646_v51, 0.0 }
 0x4b1   :  { %v1648_v52 = vpop.eup %1647 }
 0x4b2   :  { %v1029_v53 = vsel %vm887_vm1, %v1648_v52, 0.0  ;;  %v1650_v56 = vpop.eup %1649 }
 0x4b3   :  { %1021 = vadd.xlane.f32.xlu0 %v1020_v0  ;;  %1030 = vadd.xlane.f32.xlu1 %v1029_v53  ;;  %v1026_v57 = vsel %vm887_vm1, %v1650_v56, 0.0 }
 0x4b7   :  { %1027 = vadd.xlane.f32.xlu0 %v1026_v57 }
 0x524   :  { %v989_v58 = vpop.xlane.xlu1 %988 }
 0x525   :  { %1651 = vlog2.f32 %v989_v58 }
 0x528   :  { %v986_v59 = vpop.xlane.xlu0 %985  ;;  %v1001_v60 = vpop.xlane.xlu1 %1000 }
 0x529   :  { %1653 = vlog2.f32 %v986_v59 }
 0x52a   :  { %1655 = vlog2.f32 %v1001_v60 }
 0x52c   :  { %v998_v63 = vpop.xlane.xlu0 %997  ;;  %v995_v16 = vpop.xlane.xlu1 %994 }
 0x52d   :  { %1657 = vlog2.f32 %v998_v63 }
 0x52e   :  { %1659 = vlog2.f32 %v995_v16 }
 0x52f   :  { %v1652_v17 = vpop.eup %1651 }
 0x530   :  { %v1035_v1 = vmul.f32 0.6931472, %v1652_v17  ;;  %v992_v2 = vpop.xlane.xlu0 %991  ;;  %v1007_v3 = vpop.xlane.xlu1 %1006 }
 0x531   :  { %1661 = vlog2.f32 %v992_v2 }
 0x532   :  { %v1065_v6 = vsub.f32 %v1967_v39, %v1035_v1  ;;  %1663 = vlog2.f32 %v1007_v3 }
 0x533   :  { %v1654_v5 = vpop.eup %1653 }
 0x534   :  { %v1656_v9 = vpop.eup %1655  ;;  %v1033_v10 = vmul.f32 0.6931472, %v1654_v5  ;;  %1081 = vst.msk [vmem:[%s2120_s3 + $0x8] sm:$0xff] %vm887_vm1, %v1065_v6  ;;  %v1004_v12 = vpop.xlane.xlu0 %1003 }
 0x535   :  { %v1043_v11 = vmul.f32 0.6931472, %v1656_v9  ;;  %v1013_v13 = vpop.xlane.xlu1 %1012  ;;  %1665 = vlog2.f32 %v1004_v12 }
 0x536   :  { %v1064_v14 = vsub.f32 %v1971_v4, %v1033_v10  ;;  %1667 = vlog2.f32 %v1013_v13 }
 0x537   :  { %v1658_v15 = vpop.eup %1657  ;;  %v1069_v18 = vsub.f32 %v1965_v38, %v1043_v11 }
 0x538   :  { %v1660_v21 = vpop.eup %1659  ;;  %v1041_v39 = vmul.f32 0.6931472, %v1658_v15  ;;  %1080 = vst.msk [vmem:[%s2120_s3] sm:$0xff] %vm887_vm1, %v1064_v14  ;;  %v1010_v23 = vpop.xlane.xlu0 %1009 }
 0x539   :  { %v1039_v22 = vmul.f32 0.6931472, %v1660_v21  ;;  %1085 = vst.msk [vmem:[%s2120_s3 + $0x28] sm:$0xff] %vm887_vm1, %v1069_v18  ;;  %v1019_v4 = vpop.xlane.xlu1 %1018  ;;  %1669 = vlog2.f32 %v1010_v23 }
 0x53a   :  { %v1068_v24 = vsub.f32 %v1977_v49, %v1041_v39  ;;  %1671 = vlog2.f32 %v1019_v4 }
 0x53b   :  { %v1067_v38 = vsub.f32 %v1973_v44, %v1039_v22  ;;  %v1662_v25 = vpop.eup %1661 }
 0x53c   :  { %1084 = vst.msk [vmem:[%s2120_s3 + $0x20] sm:$0xff] %vm887_vm1, %v1068_v24  ;;  %v1664_v28 = vpop.eup %1663  ;;  %v1037_v29 = vmul.f32 0.6931472, %v1662_v25  ;;  %v1016_v32 = vpop.xlane.xlu0 %1015 }
 0x53d   :  { %1083 = vst.msk [vmem:[%s2120_s3 + $0x18] sm:$0xff] %vm887_vm1, %v1067_v38  ;;  %v1025_v33 = vpop.xlane.xlu1 %1024  ;;  %v1047_v49 = vmul.f32 0.6931472, %v1664_v28  ;;  %1673 = vlog2.f32 %v1016_v32 }
 0x53e   :  { %v1066_v44 = vsub.f32 %v1986_v55, %v1037_v29  ;;  %1675 = vlog2.f32 %v1025_v33 }
 0x53f   :  { %v1666_v34 = vpop.eup %1665  ;;  %v1071_v35 = vsub.f32 %v1979_v50, %v1047_v49 }
 0x540   :  { %v1668_v36 = vpop.eup %1667  ;;  %1082 = vst.msk [vmem:[%s2120_s3 + $0x10] sm:$0xff] %vm887_vm1, %v1066_v44  ;;  %v1045_v37 = vmul.f32 0.6931472, %v1666_v34  ;;  %v1022_v31 = vpop.xlane.xlu0 %1021 }
 0x541   :  { %v1031_v40 = vpop.xlane.xlu1 %1030  ;;  %1087 = vst.msk [vmem:[%s2120_s3 + $0x38] sm:$0xff] %vm887_vm1, %v1071_v35  ;;  %v1051_v30 = vmul.f32 0.6931472, %v1668_v36  ;;  %1677 = vlog2.f32 %v1022_v31 }
 0x542   :  { %v1070_v55 = vsub.f32 %v1983_v54, %v1045_v37  ;;  %1679 = vlog2.f32 %v1031_v40 }
 0x543   :  { %v1670_v50 = vpop.eup %1669  ;;  %v1073_v41 = vsub.f32 %v1993_v62, %v1051_v30 }
 0x544   :  { %v1672_v42 = vpop.eup %1671  ;;  %1086 = vst.msk [vmem:[%s2120_s3 + $0x30] sm:$0xff] %vm887_vm1, %v1070_v55  ;;  %v1049_v43 = vmul.f32 0.6931472, %v1670_v50  ;;  %v1028_v45 = vpop.xlane.xlu0 %1027 }
 0x545   :  { %1089 = vst.msk [vmem:[%s2120_s3 + $0x48] sm:$0xff] %vm887_vm1, %v1073_v41  ;;  %v1055_v46 = vmul.f32 0.6931472, %v1672_v42  ;;  %1681 = vlog2.f32 %v1028_v45 }
 0x546   :  { %v1072_v54 = vsub.f32 %v1990_v61, %v1049_v43 }
 0x547   :  { %v1674_v47 = vpop.eup %1673  ;;  %v1075_v62 = vsub.f32 %v2003_v8, %v1055_v46 }
 0x548   :  { %v1676_v48 = vpop.eup %1675  ;;  %1088 = vst.msk [vmem:[%s2120_s3 + $0x40] sm:$0xff] %vm887_vm1, %v1072_v54  ;;  %v1053_v51 = vmul.f32 0.6931472, %v1674_v47 }
 0x549   :  { %1091 = vst.msk [vmem:[%s2120_s3 + $0x58] sm:$0xff] %vm887_vm1, %v1075_v62  ;;  %v1059_v52 = vmul.f32 0.6931472, %v1676_v48 }
 0x54a   :  { %v1074_v0 = vsub.f32 %v2000_v7, %v1053_v51 }
 0x54b   :  { %v1678_v53 = vpop.eup %1677  ;;  %v1077_v61 = vsub.f32 %v2013_v20, %v1059_v52 }
 0x54c   :  { %v1680_v56 = vpop.eup %1679  ;;  %1090 = vst.msk [vmem:[%s2120_s3 + $0x50] sm:$0xff] %vm887_vm1, %v1074_v0  ;;  %v1057_v8 = vmul.f32 0.6931472, %v1678_v53 }
 0x54d   :  { %1093 = vst.msk [vmem:[%s2120_s3 + $0x68] sm:$0xff] %vm887_vm1, %v1077_v61  ;;  %v1063_v57 = vmul.f32 0.6931472, %v1680_v56 }
 0x54e   :  { %v1076_v58 = vsub.f32 %v2010_v19, %v1057_v8 }
 0x54f   :  { %v1682_v59 = vpop.eup %1681  ;;  %v1079_v7 = vsub.f32 %v2022_v26, %v1063_v57 }
 0x550   :  { %1092 = vst.msk [vmem:[%s2120_s3 + $0x60] sm:$0xff] %vm887_vm1, %v1076_v58  ;;  %v1061_v20 = vmul.f32 0.6931472, %v1682_v59 }
 0x551   :  { %1095 = vst.msk [vmem:[%s2120_s3 + $0x78] sm:$0xff] %vm887_vm1, %v1079_v7 }
 0x552   :  { %v1078_v60 = vsub.f32 %v2019_v27, %v1061_v20 }
 0x554   :  { %1094 = vst.msk [vmem:[%s2120_s3 + $0x70] sm:$0xff] %vm887_vm1, %v1078_v60 }
 0x555   :  { %1100 = vsyncmov [#allocation5] }
 0x558   :  { %s1101_s9 = vpop.sfrf %1100 }
 0x559   :  { %p1160_p0 = scmp.ne.s32.totalorder %s1101_s9, 0 }
 0x55b   :  { %1105 = shalt.err (%p1160_p0)  }
 0x55c   :  { %1107 = vsyncmov [#allocation5 + $0x1] }
 0x55f   :  { %s1108_s10 = vpop.sfrf %1107 }
 0x560   :  { %p1161_p1 = scmp.ne.s32.totalorder %s1108_s10, 0 }
 0x562   :  { %1112 = shalt.err (%p1161_p1)  }
 0x563   :  { %1114 = vsyncmov [#allocation5 + $0x2] }
 0x566   :  { %s1115_s11 = vpop.sfrf %1114 }
 0x567   :  { %p1162_p2 = scmp.ne.s32.totalorder %s1115_s11, 0 }
 0x569   :  { %1119 = shalt.err (%p1162_p2)  }

</bundles_post_ra>
